<compile_context>
chip_gen: v7x
topology: tpu7x:2x2x1
jax: 0.10.0
libtpu: 0.0.40
codegen_flags: <defaults>
</compile_context>

<pallas_src>
import jax
import jax.numpy as jnp
from jax.experimental import pallas as pl
from jax.experimental.pallas import tpu as pltpu

LANE = 128
MAX_TILE_ROWS = 1024          # (1024, 128) f32 tile = 512 KiB per input buffer


# ---------------- elementwise loss terms (run inside kernels) ----------------

def _bce_elem(p, g):
    # torch.nn.functional.binary_cross_entropy(reduction='none') clamps the
    # log terms at -100.
    logp = jnp.maximum(jnp.log(p), -100.0)
    log1mp = jnp.maximum(jnp.log(1.0 - p), -100.0)
    return -(g * logp + (1.0 - g) * log1mp)


def _focal_elem(p, g, alpha=1.0, gamma=2.0):
    bce = _bce_elem(p, g)
    # pt = exp(-bce) kept (rather than a binary select) so soft / non-binary
    # targets match the PyTorch reference exactly.
    pt = jnp.exp(-bce)
    one_minus_pt = 1.0 - pt
    if gamma == 2:
        mod = one_minus_pt * one_minus_pt
    else:
        mod = one_minus_pt ** gamma
    fl = mod * bce
    if alpha != 1:
        fl = alpha * fl
    return fl


def _l1_elem(p, g):
    return jnp.abs(p - g)


# ------------------------------ Pallas kernel --------------------------------

def _make_group_kernel(elem_fn, n_pairs, inv_counts):
    """Kernel processing n_pairs (pred, gt) tile pairs per grid step.

    refs = (a0, b0, a1, b1, ..., out0, out1, ...); each out_j is a resident
    (1, 1, 1) f32 accumulator block (one per TensorCore split).
    """

    def kernel(*refs):
        in_refs = refs[: 2 * n_pairs]
        out_refs = refs[2 * n_pairs:]
        step = pl.program_id(1)
        is_first = step == 0
        is_last = step == pl.num_programs(1) - 1

        for j in range(n_pairs):
            p = in_refs[2 * j][...].astype(jnp.float32)
            g = in_refs[2 * j + 1][...].astype(jnp.float32)
            part = jnp.sum(elem_fn(p, g))          # f32 per-tile partial sum
            o_ref = out_refs[j]

            @pl.when(is_first)
            def _init(o_ref=o_ref):
                o_ref[...] = jnp.zeros_like(o_ref)

            o_ref[...] = o_ref[...] + part

            @pl.when(is_last)
            def _finalize(o_ref=o_ref, inv=inv_counts[j]):
                o_ref[...] = o_ref[...] * inv

    return kernel


# ------------------------------ wrapper glue ---------------------------------

def _round_up(x, m):
    return ((x + m - 1) // m) * m


def _to_slab(x, rows_padded):
    """Flatten to (rows_padded, 128) in the array's native dtype, padding the
    tail with 1.0 (exactly zero loss contribution for BCE / focal / L1)."""
    x = jnp.asarray(x).reshape(-1)
    n_pad = rows_padded * LANE - x.size
    if n_pad:
        x = jnp.concatenate([x, jnp.ones((n_pad,), dtype=x.dtype)])
    return x.reshape(rows_padded, LANE)


def _reduce_mean_group(elem_fn, pairs):
    """Fused mean reduction over a list of (pred, gt) pairs sharing one loss.

    Returns a list of f32 scalars (one mean per pair) from a single tiled
    pallas_call."""
    n = len(pairs)
    counts = []
    for a, b in pairs:
        a = jnp.asarray(a)
        b = jnp.asarray(b)
        assert a.size == b.size, "pred/gt element counts must match"
        counts.append(int(a.size))

    rows_needed = max(_round_up(c, LANE) // LANE for c in counts)
    rows_min = _round_up(rows_needed, 8)
    tile_rows = min(MAX_TILE_ROWS, rows_min)
    # 2-way TensorCore split (v7x megacore) once there are >= 2 tiles of work.
    n_split = 2 if rows_min >= 2 * tile_rows else 1
    rows_padded = _round_up(rows_min, tile_rows * n_split)
    n_tiles = rows_padded // (tile_rows * n_split)

    flat = []
    for a, b in pairs:
        flat.append(_to_slab(a, rows_padded))
        flat.append(_to_slab(b, rows_padded))

    inv_counts = [1.0 / float(c) for c in counts]
    kernel = _make_group_kernel(elem_fn, n, inv_counts)

    in_specs = [
        pl.BlockSpec((tile_rows, LANE), lambda c, i: (c * n_tiles + i, 0))
        for _ in range(2 * n)
    ]
    out_specs = tuple(
        pl.BlockSpec((1, 1, 1), lambda c, i: (c, 0, 0)) for _ in range(n)
    )
    out_shape = tuple(
        jax.ShapeDtypeStruct((n_split, 1, 1), jnp.float32) for _ in range(n)
    )

    outs = pl.pallas_call(
        kernel,
        grid=(n_split, n_tiles),
        in_specs=in_specs,
        out_specs=out_specs,
        out_shape=out_shape,
        compiler_params=pltpu.CompilerParams(
            dimension_semantics=("parallel", "arbitrary"),
            vmem_limit_bytes=32 * 1024 * 1024,
        ),
    )(*flat)
    if not isinstance(outs, (list, tuple)):
        outs = (outs,)
    # Per-core partials are already scaled by 1/count; just sum them.
    return [jnp.sum(o) for o in outs]


# ------------------------------- public API ----------------------------------

def focal_loss(pred, gt, alpha=1, gamma=2):
    fn = lambda p, g: _focal_elem(p, g, alpha, gamma)
    return _reduce_mean_group(fn, [(pred, gt)])[0]


def mean_BCE_loss(pred, gt):
    return _reduce_mean_group(_bce_elem, [(pred, gt)])[0]


def fov_loss(pred, gt):
    fov, pdf = gt  # fov is unused, matching the PyTorch reference
    # NOTE: the channel-0 slice is done host-side (one extra HBM pass over a
    # (B, H, W) slab); a BlockSpec channel-select could remove it if needed.
    return _reduce_mean_group(_l1_elem, [(pred[:, 0, :, :], pdf)])[0]


class RefugeLossPallas:
    """JAX/Pallas equivalent of RefugeLoss.forward (task=None and task=k)."""

    def __init__(self, task_groups=None, opt=None):
        self.task_losses = [focal_loss, mean_BCE_loss, mean_BCE_loss,
                            fov_loss, focal_loss]
        self.task_groups = task_groups

    def __call__(self, preds, gts, task=None):
        if task is not None:
            return self.task_losses[task](preds, gts[task])
        # Fused path: tasks 0 & 4 (focal) share one call, tasks 1 & 2 (BCE)
        # share one call, fov (task 3) is its own call -> 3 launches total.
        l0, l4 = _reduce_mean_group(
            _focal_elem, [(preds[0], gts[0]), (preds[4], gts[4])])
        l1, l2 = _reduce_mean_group(
            _bce_elem, [(preds[1], gts[1]), (preds[2], gts[2])])
        _, pdf = gts[3]
        (l3,) = _reduce_mean_group(_l1_elem, [(preds[3][:, 0, :, :], pdf)])
        return jnp.stack([l0, l1, l2, l3, l4])


# ---------------------------------- demo -------------------------------------

if __name__ == "__main__":
    key = jax.random.PRNGKey(0)
    ks = jax.random.split(key, 12)
    B, H, W = 2, 16, 16

    def sig(k, shape):
        # predictions in (0, 1), as expected by binary_cross_entropy
        return jax.nn.sigmoid(jax.random.normal(k, shape, jnp.float32))

    def uni(k, shape):
        # targets in [0, 1]
        return jax.random.uniform(k, shape, jnp.float32)

    # task 0: focal loss              -> (B, 2, H, W)
    pred0, gt0 = sig(ks[0], (B, 2, H, W)), uni(ks[1], (B, 2, H, W))
    # task 1: mean BCE                -> (B, 1, H, W)
    pred1, gt1 = sig(ks[2], (B, 1, H, W)), uni(ks[3], (B, 1, H, W))
    # task 2: mean BCE                -> (B, 1, H, W)
    pred2, gt2 = sig(ks[4], (B, 1, H, W)), uni(ks[5], (B, 1, H, W))
    # task 3: fov loss, gt = (fov, pdf); uses pred[:, 0] vs pdf
    pred3 = sig(ks[6], (B, 2, H, W))
    fov = uni(ks[7], (B, H, W))
    pdf = uni(ks[8], (B, H, W))
    gt3 = (fov, pdf)
    # task 4: focal loss              -> (B, 2, H, W)
    pred4, gt4 = sig(ks[9], (B, 2, H, W)), uni(ks[10], (B, 2, H, W))

    preds = [pred0, pred1, pred2, pred3, pred4]
    gts = [gt0, gt1, gt2, gt3, gt4]

    loss_mod = RefugeLossPallas(task_groups=None, opt=None)
    losses = loss_mod(preds, gts)          # shape (5,)
    losses = jax.block_until_ready(losses)

    # also exercise the single-task branch
    single = jax.block_until_ready(loss_mod(pred1, gts, task=1))

    assert losses.shape == (5,)
    assert bool(jnp.all(jnp.isfinite(losses)))
    assert bool(jnp.allclose(single, losses[1], rtol=1e-5, atol=1e-6))
    print("KERNEL_OK")
</pallas_src>

<mosaic_0001>
module attributes {stable_mosaic.version = 11 : i64} {
  func.func @kernel(%arg0: i32, %arg1: i32, %arg2: memref<8x128xf32, #tpu.memory_space<vmem>>, %arg3: memref<8x128xf32, #tpu.memory_space<vmem>>, %arg4: memref<8x128xf32, #tpu.memory_space<vmem>>, %arg5: memref<8x128xf32, #tpu.memory_space<vmem>>, %arg6: memref<1x1x1xf32, #tpu.memory_space<vmem>>, %arg7: memref<1x1x1xf32, #tpu.memory_space<vmem>>) attributes {dimension_semantics = [#tpu.dimension_semantics<parallel>, #tpu.dimension_semantics<arbitrary>], iteration_bounds = array<i64: 1, 1>, scalar_prefetch = 0 : i64, scratch_operands = 0 : i64, tpu.core_type = #tpu.core_type<tc>, window_params = [{transform_indices = @transform_0, window_bounds = array<i64: 8, 128>}, {transform_indices = @transform_1, window_bounds = array<i64: 8, 128>}, {transform_indices = @transform_2, window_bounds = array<i64: 8, 128>}, {transform_indices = @transform_3, window_bounds = array<i64: 8, 128>}, {transform_indices = @transform_4, window_bounds = array<i64: 1, 1, 1>}, {transform_indices = @transform_5, window_bounds = array<i64: 1, 1, 1>}]} {
    %c0_i32 = arith.constant 0 : i32
    %0 = arith.cmpi eq, %arg1, %c0_i32 : i32
    %c0_i32_0 = arith.constant 0 : i32
    %1 = arith.cmpi eq, %arg1, %c0_i32_0 : i32
    %c0 = arith.constant 0 : index
    %c0_1 = arith.constant 0 : index
    %2 = vector.load %arg2[%c0, %c0_1] : memref<8x128xf32, #tpu.memory_space<vmem>>, vector<8x128xf32>
    %c0_2 = arith.constant 0 : index
    %c0_3 = arith.constant 0 : index
    %3 = vector.load %arg3[%c0_2, %c0_3] : memref<8x128xf32, #tpu.memory_space<vmem>>, vector<8x128xf32>
    %4 = math.log %2 : vector<8x128xf32>
    %cst = arith.constant -1.000000e+02 : f32
    %5 = vector.broadcast %cst : f32 to vector<8x128xf32>
    %6 = arith.maximumf %4, %5 : vector<8x128xf32>
    %cst_4 = arith.constant 1.000000e+00 : f32
    %7 = vector.broadcast %cst_4 : f32 to vector<8x128xf32>
    %8 = arith.subf %7, %2 : vector<8x128xf32>
    %9 = math.log %8 : vector<8x128xf32>
    %cst_5 = arith.constant -1.000000e+02 : f32
    %10 = vector.broadcast %cst_5 : f32 to vector<8x128xf32>
    %11 = arith.maximumf %9, %10 : vector<8x128xf32>
    %12 = arith.mulf %3, %6 : vector<8x128xf32>
    %cst_6 = arith.constant 1.000000e+00 : f32
    %13 = vector.broadcast %cst_6 : f32 to vector<8x128xf32>
    %14 = arith.subf %13, %3 : vector<8x128xf32>
    %15 = arith.mulf %14, %11 : vector<8x128xf32>
    %16 = arith.addf %12, %15 : vector<8x128xf32>
    %cst_7 = arith.constant 0.000000e+00 : f32
    %17 = vector.broadcast %cst_7 : f32 to vector<8x128xf32>
    %18 = arith.subf %17, %16 : vector<8x128xf32>
    %cst_8 = arith.constant 0.000000e+00 : f32
    %19 = vector.broadcast %cst_8 : f32 to vector<8x128xf32>
    %20 = arith.subf %19, %18 : vector<8x128xf32>
    %21 = math.exp %20 : vector<8x128xf32>
    %cst_9 = arith.constant 1.000000e+00 : f32
    %22 = vector.broadcast %cst_9 : f32 to vector<8x128xf32>
    %23 = arith.subf %22, %21 : vector<8x128xf32>
    %24 = arith.mulf %23, %23 : vector<8x128xf32>
    %25 = arith.mulf %24, %18 : vector<8x128xf32>
    %26 = vector.shape_cast %25 : vector<8x128xf32> to vector<1x8x128xf32>
    %cst_10 = arith.constant dense<0.000000e+00> : vector<1xf32>
    %27 = vector.multi_reduction <add>, %26, %cst_10 [1, 2] : vector<1x8x128xf32> to vector<1xf32>
    %28 = vector.shape_cast %27 : vector<1xf32> to vector<1x1x1xf32>
    %29 = vector.extract %28[0, 0, 0] : f32 from vector<1x1x1xf32>
    %30 = arith.extui %0 : i1 to i32
    %c0_i32_11 = arith.constant 0 : i32
    %31 = arith.cmpi ne, %30, %c0_i32_11 : i32
    scf.if %31 {
      %cst_39 = arith.constant 0.000000e+00 : f32
      %74 = vector.broadcast %cst_39 : f32 to vector<1x1x1xf32>
      %c0_40 = arith.constant 0 : index
      %c0_41 = arith.constant 0 : index
      %c0_42 = arith.constant 0 : index
      %75 = vector.load %arg6[%c0_40, %c0_41, %c0_42] : memref<1x1x1xf32, #tpu.memory_space<vmem>>, vector<1x1x1xf32>
      tpu.vector_store %arg6[%c0_40, %c0_41, %c0_42], %74 {strides = array<i32>} : memref<1x1x1xf32, #tpu.memory_space<vmem>>, vector<1x1x1xf32>,
    } else {
    }
    %c0_12 = arith.constant 0 : index
    %c0_13 = arith.constant 0 : index
    %c0_14 = arith.constant 0 : index
    %32 = vector.load %arg6[%c0_12, %c0_13, %c0_14] : memref<1x1x1xf32, #tpu.memory_space<vmem>>, vector<1x1x1xf32>
    %33 = vector.broadcast %29 : f32 to vector<1x1x1xf32>
    %34 = arith.addf %32, %33 : vector<1x1x1xf32>
    %c0_15 = arith.constant 0 : index
    %c0_16 = arith.constant 0 : index
    %c0_17 = arith.constant 0 : index
    %35 = vector.load %arg6[%c0_15, %c0_16, %c0_17] : memref<1x1x1xf32, #tpu.memory_space<vmem>>, vector<1x1x1xf32>
    tpu.vector_store %arg6[%c0_15, %c0_16, %c0_17], %34 {strides = array<i32>} : memref<1x1x1xf32, #tpu.memory_space<vmem>>, vector<1x1x1xf32>,
    %36 = arith.extui %1 : i1 to i32
    %c0_i32_18 = arith.constant 0 : i32
    %37 = arith.cmpi ne, %36, %c0_i32_18 : i32
    scf.if %37 {
      %c0_39 = arith.constant 0 : index
      %c0_40 = arith.constant 0 : index
      %c0_41 = arith.constant 0 : index
      %74 = vector.load %arg6[%c0_39, %c0_40, %c0_41] : memref<1x1x1xf32, #tpu.memory_space<vmem>>, vector<1x1x1xf32>
      %cst_42 = arith.constant 9.765625E-4 : f32
      %75 = vector.broadcast %cst_42 : f32 to vector<1x1x1xf32>
      %76 = arith.mulf %74, %75 : vector<1x1x1xf32>
      %c0_43 = arith.constant 0 : index
      %c0_44 = arith.constant 0 : index
      %c0_45 = arith.constant 0 : index
      %77 = vector.load %arg6[%c0_43, %c0_44, %c0_45] : memref<1x1x1xf32, #tpu.memory_space<vmem>>, vector<1x1x1xf32>
      tpu.vector_store %arg6[%c0_43, %c0_44, %c0_45], %76 {strides = array<i32>} : memref<1x1x1xf32, #tpu.memory_space<vmem>>, vector<1x1x1xf32>,
    } else {
    }
    %c0_19 = arith.constant 0 : index
    %c0_20 = arith.constant 0 : index
    %38 = vector.load %arg4[%c0_19, %c0_20] : memref<8x128xf32, #tpu.memory_space<vmem>>, vector<8x128xf32>
    %c0_21 = arith.constant 0 : index
    %c0_22 = arith.constant 0 : index
    %39 = vector.load %arg5[%c0_21, %c0_22] : memref<8x128xf32, #tpu.memory_space<vmem>>, vector<8x128xf32>
    %40 = math.log %38 : vector<8x128xf32>
    %cst_23 = arith.constant -1.000000e+02 : f32
    %41 = vector.broadcast %cst_23 : f32 to vector<8x128xf32>
    %42 = arith.maximumf %40, %41 : vector<8x128xf32>
    %cst_24 = arith.constant 1.000000e+00 : f32
    %43 = vector.broadcast %cst_24 : f32 to vector<8x128xf32>
    %44 = arith.subf %43, %38 : vector<8x128xf32>
    %45 = math.log %44 : vector<8x128xf32>
    %cst_25 = arith.constant -1.000000e+02 : f32
    %46 = vector.broadcast %cst_25 : f32 to vector<8x128xf32>
    %47 = arith.maximumf %45, %46 : vector<8x128xf32>
    %48 = arith.mulf %39, %42 : vector<8x128xf32>
    %cst_26 = arith.constant 1.000000e+00 : f32
    %49 = vector.broadcast %cst_26 : f32 to vector<8x128xf32>
    %50 = arith.subf %49, %39 : vector<8x128xf32>
    %51 = arith.mulf %50, %47 : vector<8x128xf32>
    %52 = arith.addf %48, %51 : vector<8x128xf32>
    %cst_27 = arith.constant 0.000000e+00 : f32
    %53 = vector.broadcast %cst_27 : f32 to vector<8x128xf32>
    %54 = arith.subf %53, %52 : vector<8x128xf32>
    %cst_28 = arith.constant 0.000000e+00 : f32
    %55 = vector.broadcast %cst_28 : f32 to vector<8x128xf32>
    %56 = arith.subf %55, %54 : vector<8x128xf32>
    %57 = math.exp %56 : vector<8x128xf32>
    %cst_29 = arith.constant 1.000000e+00 : f32
    %58 = vector.broadcast %cst_29 : f32 to vector<8x128xf32>
    %59 = arith.subf %58, %57 : vector<8x128xf32>
    %60 = arith.mulf %59, %59 : vector<8x128xf32>
    %61 = arith.mulf %60, %54 : vector<8x128xf32>
    %62 = vector.shape_cast %61 : vector<8x128xf32> to vector<1x8x128xf32>
    %cst_30 = arith.constant dense<0.000000e+00> : vector<1xf32>
    %63 = vector.multi_reduction <add>, %62, %cst_30 [1, 2] : vector<1x8x128xf32> to vector<1xf32>
    %64 = vector.shape_cast %63 : vector<1xf32> to vector<1x1x1xf32>
    %65 = vector.extract %64[0, 0, 0] : f32 from vector<1x1x1xf32>
    %66 = arith.extui %0 : i1 to i32
    %c0_i32_31 = arith.constant 0 : i32
    %67 = arith.cmpi ne, %66, %c0_i32_31 : i32
    scf.if %67 {
      %cst_39 = arith.constant 0.000000e+00 : f32
      %74 = vector.broadcast %cst_39 : f32 to vector<1x1x1xf32>
      %c0_40 = arith.constant 0 : index
      %c0_41 = arith.constant 0 : index
      %c0_42 = arith.constant 0 : index
      %75 = vector.load %arg7[%c0_40, %c0_41, %c0_42] : memref<1x1x1xf32, #tpu.memory_space<vmem>>, vector<1x1x1xf32>
      tpu.vector_store %arg7[%c0_40, %c0_41, %c0_42], %74 {strides = array<i32>} : memref<1x1x1xf32, #tpu.memory_space<vmem>>, vector<1x1x1xf32>,
    } else {
    }
    %c0_32 = arith.constant 0 : index
    %c0_33 = arith.constant 0 : index
    %c0_34 = arith.constant 0 : index
    %68 = vector.load %arg7[%c0_32, %c0_33, %c0_34] : memref<1x1x1xf32, #tpu.memory_space<vmem>>, vector<1x1x1xf32>
    %69 = vector.broadcast %65 : f32 to vector<1x1x1xf32>
    %70 = arith.addf %68, %69 : vector<1x1x1xf32>
    %c0_35 = arith.constant 0 : index
    %c0_36 = arith.constant 0 : index
    %c0_37 = arith.constant 0 : index
    %71 = vector.load %arg7[%c0_35, %c0_36, %c0_37] : memref<1x1x1xf32, #tpu.memory_space<vmem>>, vector<1x1x1xf32>
    tpu.vector_store %arg7[%c0_35, %c0_36, %c0_37], %70 {strides = array<i32>} : memref<1x1x1xf32, #tpu.memory_space<vmem>>, vector<1x1x1xf32>,
    %72 = arith.extui %1 : i1 to i32
    %c0_i32_38 = arith.constant 0 : i32
    %73 = arith.cmpi ne, %72, %c0_i32_38 : i32
    scf.if %73 {
      %c0_39 = arith.constant 0 : index
      %c0_40 = arith.constant 0 : index
      %c0_41 = arith.constant 0 : index
      %74 = vector.load %arg7[%c0_39, %c0_40, %c0_41] : memref<1x1x1xf32, #tpu.memory_space<vmem>>, vector<1x1x1xf32>
      %cst_42 = arith.constant 9.765625E-4 : f32
      %75 = vector.broadcast %cst_42 : f32 to vector<1x1x1xf32>
      %76 = arith.mulf %74, %75 : vector<1x1x1xf32>
      %c0_43 = arith.constant 0 : index
      %c0_44 = arith.constant 0 : index
      %c0_45 = arith.constant 0 : index
      %77 = vector.load %arg7[%c0_43, %c0_44, %c0_45] : memref<1x1x1xf32, #tpu.memory_space<vmem>>, vector<1x1x1xf32>
      tpu.vector_store %arg7[%c0_43, %c0_44, %c0_45], %76 {strides = array<i32>} : memref<1x1x1xf32, #tpu.memory_space<vmem>>, vector<1x1x1xf32>,
    } else {
    }
    return
  }
  func.func @transform_0(%arg0: i32, %arg1: i32) -> (i32, i32) {
    %c1_i32 = arith.constant 1 : i32
    %0 = arith.muli %arg0, %c1_i32 : i32
    %1 = arith.addi %0, %arg1 : i32
    %c0_i32 = arith.constant 0 : i32
    %c0_i32_0 = arith.constant 0 : i32
    return %1, %c0_i32 : i32, i32
  }
  func.func @transform_1(%arg0: i32, %arg1: i32) -> (i32, i32) {
    %c1_i32 = arith.constant 1 : i32
    %0 = arith.muli %arg0, %c1_i32 : i32
    %1 = arith.addi %0, %arg1 : i32
    %c0_i32 = arith.constant 0 : i32
    %c0_i32_0 = arith.constant 0 : i32
    return %1, %c0_i32 : i32, i32
  }
  func.func @transform_2(%arg0: i32, %arg1: i32) -> (i32, i32) {
    %c1_i32 = arith.constant 1 : i32
    %0 = arith.muli %arg0, %c1_i32 : i32
    %1 = arith.addi %0, %arg1 : i32
    %c0_i32 = arith.constant 0 : i32
    %c0_i32_0 = arith.constant 0 : i32
    return %1, %c0_i32 : i32, i32
  }
  func.func @transform_3(%arg0: i32, %arg1: i32) -> (i32, i32) {
    %c1_i32 = arith.constant 1 : i32
    %0 = arith.muli %arg0, %c1_i32 : i32
    %1 = arith.addi %0, %arg1 : i32
    %c0_i32 = arith.constant 0 : i32
    %c0_i32_0 = arith.constant 0 : i32
    return %1, %c0_i32 : i32, i32
  }
  func.func @transform_4(%arg0: i32, %arg1: i32) -> (i32, i32, i32) {
    %c0_i32 = arith.constant 0 : i32
    %c0_i32_0 = arith.constant 0 : i32
    %c0_i32_1 = arith.constant 0 : i32
    return %arg0, %c0_i32, %c0_i32_0 : i32, i32, i32
  }
  func.func @transform_5(%arg0: i32, %arg1: i32) -> (i32, i32, i32) {
    %c0_i32 = arith.constant 0 : i32
    %c0_i32_0 = arith.constant 0 : i32
    %c0_i32_1 = arith.constant 0 : i32
    return %arg0, %c0_i32, %c0_i32_0 : i32, i32, i32
  }
}

</mosaic_0001>

<bundles_post_ra>
// kernel: tpu_custom_call.1
= control target key start
LH: loop header
LB: loop body
LE: loop exit
PB: predicated region body
PF: predicated region fallthrough
CT: control target
= control target key end

     0   :  { %11 = vsyncpa [#allocation3], 0  ;;  %s455_s0 = inlined_call_operand.hbm [shape: f32[8,128], index: 0, kind: input, shape index: {}]   ;;  %s456_s1 = inlined_call_operand.hbm [shape: f32[8,128], index: 1, kind: input, shape index: {}]   ;;  %s457_s2 = inlined_call_operand.hbm [shape: f32[8,128], index: 2, kind: input, shape index: {}]   ;;  %s458_s3 = inlined_call_operand.vmem [shape: f32[8,128], index: 3, kind: input, shape index: {}]   ;;  %s459_s4 = inlined_call_operand.hbm [shape: f32[1,1,1], index: 4, kind: output, shape index: {0}]   ;;  %s460_s5 = inlined_call_operand.hbm [shape: f32[1,1,1], index: 5, kind: output, shape index: {1}]  }
   0x1   :  { %12 = vsyncpa [#allocation6], 0 }
   0x2   :  { %13 = vsyncpa [#allocation4], 0 }
   0x3   :  { %14 = vsyncpa [#allocation10], 0  ;;  %s350_s18 = smov [#allocation5]   ;;  %s351_s20 = smov [#allocation2]  }
   0x4   :  { %s37_s19 = sshll.u32 %s350_s18, 4  ;;  %s24_s21 = sshll.u32 %s351_s20, 4  ;;  %s38_s19 = int_to_ptr.vmem [resolvable:$true] %s37_s19  ;;  %s25_s21 = int_to_ptr.vmem [resolvable:$true] %s24_s21 }
   0x5   :  { %s232_s24 = scalar_lea.hbm %s456_s1, 128 }
   0x6   :  { %p233_p0 = scmp.ne.s32.totalorder %s456_s1, %s232_s24  ;;  %p236_p1 = scmp.lt.u32.totalorder %s232_s24, %s456_s1 }
   0x8   :  { %p238_p2 = pnand %p236_p1, %p233_p0 }
   0xa   :  { %241 = shalt.err (!%p238_p2)
}
   0xb   :  { %s242_s29 = scalar_lea.vmem %s38_s19, 128  ;;  %p247_p4 = scmp.lt.s32.totalorder %s38_s19, %s38_s19 }
   0xc   :  { %p243_p3 = scmp.ne.s32.totalorder %s38_s19, %s242_s29  ;;  %p248_p5 = scmp.lt.s32.totalorder %s242_s29, %s242_s29 }
   0xe   :  { %p249_p6 = por %p248_p5, %p247_p4 }
  0x10   :  { %p250_p7 = pnand %p249_p6, %p243_p3 }
  0x12   :  { %253 = shalt.err (!%p250_p7)
}
  0x13   :  { %40 = dma.hbm_to_vmem [thread:$0]  %s456_s1, 128, %s38_s19, [#allocation6]  }
  0x14   :  { %s254_s9 = scalar_lea.hbm %s455_s0, 128 }
  0x15   :  { %p255_p8 = scmp.ne.s32.totalorder %s455_s0, %s254_s9  ;;  %p258_p9 = scmp.lt.u32.totalorder %s254_s9, %s455_s0 }
  0x17   :  { %p260_p10 = pnand %p258_p9, %p255_p8 }
  0x19   :  { %263 = shalt.err (!%p260_p10)
}
  0x1a   :  { %s264_s14 = scalar_lea.vmem %s25_s21, 128  ;;  %p269_p12 = scmp.lt.s32.totalorder %s25_s21, %s25_s21 }
  0x1b   :  { %p265_p11 = scmp.ne.s32.totalorder %s25_s21, %s264_s14  ;;  %p270_p13 = scmp.lt.s32.totalorder %s264_s14, %s264_s14 }
  0x1d   :  { %p271_p0 = por %p270_p13, %p269_p12 }
  0x1f   :  { %p272_p1 = pnand %p271_p0, %p265_p11 }
  0x21   :  { %275 = shalt.err (!%p272_p1)
}
  0x22   :  { %27 = dma.hbm_to_vmem [thread:$0]  %s455_s0, 128, %s25_s21, [#allocation3]  }
  0x23   :  { %s352_s16 = smov [#allocation7]   ;;  %s276_s20 = scalar_lea.hbm %s457_s2, 128 }
  0x24   :  { %s50_s17 = sshll.u32 %s352_s16, 4  ;;  %p277_p2 = scmp.ne.s32.totalorder %s457_s2, %s276_s20  ;;  %s51_s17 = int_to_ptr.vmem [resolvable:$true] %s50_s17 }
  0x25   :  { %p280_p3 = scmp.lt.u32.totalorder %s276_s20, %s457_s2 }
  0x27   :  { %p282_p4 = pnand %p280_p3, %p277_p2 }
  0x29   :  { %285 = shalt.err (!%p282_p4)
}
  0x2a   :  { %s286_s26 = scalar_lea.vmem %s51_s17, 128  ;;  %p291_p6 = scmp.lt.s32.totalorder %s51_s17, %s51_s17 }
  0x2b   :  { %p287_p5 = scmp.ne.s32.totalorder %s51_s17, %s286_s26  ;;  %p292_p7 = scmp.lt.s32.totalorder %s286_s26, %s286_s26 }
  0x2d   :  { %p293_p8 = por %p292_p7, %p291_p6 }
  0x2f   :  { %p294_p9 = pnand %p293_p8, %p287_p5 }
  0x31   :  { %297 = shalt.err (!%p294_p9)
}
  0x32   :  { %53 = dma.hbm_to_vmem [thread:$0]  %s457_s2, 128, %s51_s17, [#allocation6]  }
  0x33   :  { %342 = dma.done.wait [#allocation3], 128  }
  0x34   :  { %343 = vsyncadd [#allocation3], 4294967168 }
  0x35   :  { %344 = dma.done.wait [#allocation6], 256  }
  0x36   :  { %345 = vsyncadd [#allocation6], 4294967040  ;;  %v86_v0 = vld [vmem:[#allocation2] sm:$0xff]  ;;  %v131_v1 = vld [vmem:[#allocation7] sm:$0xff]  ;;  %vm118_vm0 = vcmask 0   ;;  %v353_v40 = vmov 0.0  }
  0x37   :  { %220 = vlog2.f32 %v86_v0  ;;  %v91_v2 = vsub.f32 1.0, %v86_v0  ;;  %v136_v3 = vsub.f32 1.0, %v131_v1  ;;  %v87_v5 = vld [vmem:[#allocation5] sm:$0xff]  ;;  %v132_v8 = vld [vmem:[%s458_s3] sm:$0xff]  ;;  %119 = vst.msk [vmem:[#allocation8] sm:$0x1] %vm118_vm0, %v353_v40 }
  0x38   :  { %222 = vlog2.f32 %v131_v1  ;;  %v96_v14 = vsub.f32 1.0, %v87_v5  ;;  %v141_v17 = vsub.f32 1.0, %v132_v8  ;;  %163 = vst.msk [vmem:[#allocation9] sm:$0x1] %vm118_vm0, %v353_v40  ;;  %s354_s29 = smov [#allocation8]   ;;  %s355_s6 = smov [#allocation9]  }
  0x39   :  { %224 = vlog2.f32 %v91_v2  ;;  %s180_s30 = sshll.u32 %s354_s29, 4  ;;  %s190_s7 = sshll.u32 %s355_s6, 4  ;;  %s181_s30 = int_to_ptr.vmem [resolvable:$true] %s180_s30  ;;  %s191_s7 = int_to_ptr.vmem [resolvable:$true] %s190_s7 }
  0x3a   :  { %226 = vlog2.f32 %v136_v3  ;;  %s298_s8 = scalar_lea.vmem %s181_s30, 16  ;;  %s302_s9 = scalar_lea.vmem %s181_s30, 32 }
  0x3b   :  { %p299_p10 = scmp.ne.s32.totalorder %s181_s30, %s298_s8  ;;  %p303_p11 = scmp.lt.s32.totalorder %s181_s30, %s181_s30 }
  0x3c   :  { %p304_p12 = scmp.lt.s32.totalorder %s302_s9, %s298_s8 }
  0x3e   :  { %v120_v55 = vld [vmem:[#allocation8] sm:$0x1]  ;;  %p305_p13 = por %p304_p12, %p303_p11 }
  0x3f   :  { %v164_v58 = vld [vmem:[#allocation9] sm:$0x1] }
  0x40   :  { %p306_p0 = pnand %p305_p13, %p299_p10 }
  0x41   :  { %v221_v4 = vpop.eup %220 }
  0x42   :  { %v223_v6 = vpop.eup %222  ;;  %v89_v7 = vmul.f32 0.6931472, %v221_v4 }
  0x43   :  { %v225_v9 = vpop.eup %224  ;;  %v134_v10 = vmul.f32 0.6931472, %v223_v6 }
  0x44   :  { %v227_v11 = vpop.eup %226  ;;  %v90_v12 = vmax.f32 %v89_v7, -100.0  ;;  %v93_v13 = vmul.f32 0.6931472, %v225_v9 }
  0x45   :  { %v135_v15 = vmax.f32 %v134_v10, -100.0  ;;  %v138_v16 = vmul.f32 0.6931472, %v227_v11 }
  0x46   :  { %v94_v18 = vmax.f32 %v93_v13, -100.0  ;;  %v95_v19 = vmul.f32 %v90_v12, %v87_v5 }
  0x47   :  { %v139_v20 = vmax.f32 %v138_v16, -100.0  ;;  %v140_v21 = vmul.f32 %v135_v15, %v132_v8 }
  0x48   :  { %v97_v22 = vmul.f32 %v96_v14, %v94_v18 }
  0x49   :  { %v142_v23 = vmul.f32 %v141_v17, %v139_v20 }
  0x4a   :  { %v98_v24 = vadd.f32 %v97_v22, %v95_v19 }
  0x4b   :  { %v143_v25 = vadd.f32 %v142_v23, %v140_v21 }
  0x4c   :  { %v99_v26 = vsub.f32 0.0, %v98_v24 }
  0x4d   :  { %v144_v27 = vsub.f32 0.0, %v143_v25 }
  0x4e   :  { %v100_v28 = vsub.f32 0.0, %v99_v26 }
  0x4f   :  { %v145_v29 = vsub.f32 0.0, %v144_v27 }
  0x50   :  { %v101_v30 = vmul.f32 1.442695, %v100_v28 }
  0x51   :  { %v146_v31 = vmul.f32 1.442695, %v145_v29 }
  0x52   :  { %228 = vpow2.f32 %v101_v30 }
  0x53   :  { %230 = vpow2.f32 %v146_v31 }
  0x5c   :  { %v229_v32 = vpop.eup %228 }
  0x5d   :  { %v231_v33 = vpop.eup %230  ;;  %v103_v34 = vsub.f32 1.0, %v229_v32 }
  0x5e   :  { %v148_v35 = vsub.f32 1.0, %v231_v33 }
  0x5f   :  { %v104_v36 = vmul.f32 %v103_v34, %v103_v34 }
  0x60   :  { %v149_v37 = vmul.f32 %v148_v35, %v148_v35 }
  0x61   :  { %v105_v38 = vmul.f32 %v104_v36, %v99_v26 }
  0x62   :  { %v150_v39 = vmul.f32 %v149_v37, %v144_v27 }
  0x63   :  { %106 = vadd.xlane.f32.xlu0 %v105_v38 }
  0x67   :  { %151 = vadd.xlane.f32.xlu0 %v150_v39 }
  0xf0   :  { %v107_v41 = vpop.xlane.xlu0 %106 }
  0xf1   :  { %v108_v42 = vrot.slane %v107_v41, 4 }
  0xf3   :  { %v109_v43 = vadd.f32 %v108_v42, %v107_v41 }
  0xf4   :  { %v152_v44 = vpop.xlane.xlu0 %151 }
  0xf5   :  { %v110_v45 = vrot.slane %v109_v43, 2  ;;  %v153_v46 = vrot.slane %v152_v44, 4 }
  0xf7   :  { %v154_v47 = vadd.f32 %v153_v46, %v152_v44  ;;  %v111_v48 = vadd.f32 %v110_v45, %v109_v43 }
  0xf9   :  { %v155_v49 = vrot.slane %v154_v47, 2  ;;  %v112_v50 = vrot.slane %v111_v48, 1 }
  0xfb   :  { %v156_v51 = vadd.f32 %v155_v49, %v154_v47  ;;  %v113_v52 = vadd.f32 %v112_v50, %v111_v48 }
  0xfd   :  { %210 = vpush %v113_v52  ;;  %v157_v53 = vrot.slane %v156_v51, 1 }
  0xff   :  { %v158_v54 = vadd.f32 %v157_v53, %v156_v51 }
 0x101   :  { %212 = vpush %v158_v54 }
 0x12e   :  { %s211_s2 = spop %210 }
 0x12f   :  { %v121_v56 = vstv %s211_s2 }
 0x130   :  { %v122_v57 = vadd.f32 %v121_v56, %v120_v55 }
 0x132   :  { %124 = vst.msk [vmem:[#allocation8] sm:$0x1] %vm118_vm0, %v122_v57  ;;  %s213_s3 = spop %212 }
 0x133   :  { %v165_v59 = vstv %s213_s3 }
 0x134   :  { %v166_v60 = vadd.f32 %v165_v59, %v164_v58 }
 0x136   :  { %167 = vst.msk [vmem:[#allocation9] sm:$0x1] %vm118_vm0, %v166_v60 }
 0x139   :  { %v128_v61 = vld [vmem:[#allocation8] sm:$0x1] }
 0x13a   :  { %v129_v62 = vmul.f32 0.0009765625, %v128_v61 }
 0x13c   :  { %130 = vst.msk [vmem:[#allocation8] sm:$0x1] %vm118_vm0, %v129_v62 }
 0x13d   :  { %309 = shalt.err (!%p306_p0)
}
 0x13e   :  { %s310_s12 = scalar_lea.hbm %s459_s4, 16 }
 0x13f   :  { %p311_p1 = scmp.ne.s32.totalorder %s459_s4, %s310_s12  ;;  %p314_p2 = scmp.lt.u32.totalorder %s310_s12, %s459_s4 }
 0x141   :  { %p316_p3 = pnand %p314_p2, %p311_p1 }
 0x143   :  { %319 = shalt.err (!%p316_p3)
}
 0x144   :  { %183 = dma.vmem_to_hbm [thread:$0]  %s181_s30, 16, %s459_s4, [#allocation4]   ;;  %v171_v63 = vld [vmem:[#allocation9] sm:$0x1] }
 0x145   :  { %v172_v0 = vmul.f32 0.0009765625, %v171_v63  ;;  %s320_s18 = scalar_lea.vmem %s191_s7, 16  ;;  %s324_s19 = scalar_lea.vmem %s191_s7, 32 }
 0x146   :  { %p321_p4 = scmp.ne.s32.totalorder %s191_s7, %s320_s18  ;;  %p325_p5 = scmp.lt.s32.totalorder %s191_s7, %s191_s7 }
 0x147   :  { %173 = vst.msk [vmem:[#allocation9] sm:$0x1] %vm118_vm0, %v172_v0  ;;  %p326_p6 = scmp.lt.s32.totalorder %s324_s19, %s320_s18 }
 0x149   :  { %p327_p7 = por %p326_p6, %p325_p5 }
 0x14b   :  { %p328_p8 = pnand %p327_p7, %p321_p4 }
 0x14d   :  { %331 = shalt.err (!%p328_p8)
}
 0x14e   :  { %s332_s23 = scalar_lea.hbm %s460_s5, 16 }
 0x14f   :  { %p333_p9 = scmp.ne.s32.totalorder %s460_s5, %s332_s23  ;;  %p336_p10 = scmp.lt.u32.totalorder %s332_s23, %s460_s5 }
 0x151   :  { %p338_p11 = pnand %p336_p10, %p333_p9 }
 0x153   :  { %341 = shalt.err (!%p338_p11)
}
 0x154   :  { %193 = dma.vmem_to_hbm [thread:$0]  %s191_s7, 16, %s460_s5, [#allocation10]  }
 0x155   :  { %346 = dma.done.wait [#allocation4], 16  }
 0x156   :  { %347 = vsyncadd [#allocation4], 4294967280 }
 0x157   :  { %348 = dma.done.wait [#allocation10], 16  }
 0x158   :  { %349 = vsyncadd [#allocation10], 4294967280 }
 0x159   :  { %200 = vsyncpa [#allocation3], 1 }
 0x15a   :  { %201 = vsyncpa [#allocation6], 1 }
 0x15b   :  { %202 = vsyncpa [#allocation4], 1 }
 0x15c   :  { %203 = vsyncpa [#allocation10], 1 }

</bundles_post_ra>
